<compile_context>
chip_gen: v5e
topology: v5e:2x2
jax: 0.10.0
libtpu: 0.0.40
codegen_flags: <defaults>
</compile_context>

<pallas_src>
import functools

import jax
import jax.numpy as jnp
import numpy as np
from jax.experimental import pallas as pl
from jax.experimental.pallas import tpu as pltpu


# ------------------------------ fused kernel ------------------------------- #

def _encoder_kernel(ind_ref, feat_ref, prm_ref, wbig_ref, adj_ref, out_ref,
                    *, n_head, d_hid, n_load, alpha):
    n_nodes, d_node = feat_ref.shape
    d_out = n_head * d_hid

    # packed parameter slab: [w_align; b_align; ln_gamma; ln_beta; w_f2^T (H rows)]
    w_al = prm_ref[0:1, :]
    b_al = prm_ref[1:2, :]
    gamma = prm_ref[2:3, :]
    beta = prm_ref[3:4, :]
    w_f2t = prm_ref[4:4 + n_head, :]                       # (H, d_node)

    # --- 1) align: nn.Linear(1, d_node) on the load rows ---------------------
    # feat rows [0, n_load) hold the scalar load value in column 0; rows
    # [n_load, n_nodes) hold the raw generator feature vectors.
    feat = feat_ref[...]
    la = feat[:, 0:1] * w_al + b_al                        # (n_nodes, d_node)
    row_id = jax.lax.broadcasted_iota(jnp.int32, (n_nodes, 1), 0)
    src = jnp.where(row_id < n_load, la, feat)             # aligned loads | generators

    # --- 2) scatter x[ind_all[i]] = src[i] via ONE one-hot matmul (MXU) ------
    # oh[j, i] = (j == ind_all[i]); unreferenced rows stay zero, matching
    # `x = torch.zeros(...); x[ind] = ...` (indices assumed distinct).
    oh = (jax.lax.broadcasted_iota(jnp.int32, (n_nodes, n_nodes), 0)
          == ind_ref[...]).astype(jnp.float32)
    x = jnp.dot(oh, src, preferred_element_type=jnp.float32)   # (n_nodes, d_node)

    # --- 3) LayerNorm(d_node, eps=1e-6) --------------------------------------
    mean = jnp.mean(x, axis=-1, keepdims=True)
    var = jnp.mean((x - mean) ** 2, axis=-1, keepdims=True)
    x = (x - mean) * jax.lax.rsqrt(var + 1e-6) * gamma + beta

    # (dropout == identity in eval mode)

    # --- 4) multi-head GAT ----------------------------------------------------
    # Wh for all heads AND f1 for all heads from ONE matmul (w_f1 folded into
    # the last H columns of wbig at trace time).
    whf1 = jnp.dot(x, wbig_ref[...], preferred_element_type=jnp.float32)  # (n, H*d_hid + H)
    wh_all = whf1[:, :d_out]                               # (n, H*d_hid)
    f1_all = whf1[:, d_out:d_out + n_head]                 # (n, H)
    # f2^T for all heads directly from x (a2 folded): (H, n)
    f2t_all = jax.lax.dot_general(
        w_f2t, x, (((1,), (1,)), ((), ())), preferred_element_type=jnp.float32)

    adj_f = adj_ref[...].astype(jnp.float32)               # 0/1 mask (int8 -> f32)

    outs = []
    for h in range(n_head):                                # static unroll (tiny n_head)
        e = f1_all[:, h:h + 1] + f2t_all[h:h + 1, :]       # (n, n)
        e = jnp.where(e > 0, e, alpha * e)                 # LeakyReLU(alpha)
        m = jnp.max(e, axis=-1, keepdims=True)
        p = jnp.exp(e - m) * adj_f                         # multiplicative adjacency mask
        attn = p * pl.reciprocal(jnp.sum(p, axis=-1, keepdims=True), approx=True)
        wh_h = wh_all[:, h * d_hid:(h + 1) * d_hid]
        ho = jnp.dot(attn, wh_h, preferred_element_type=jnp.float32)
        outs.append(jnp.where(ho > 0, ho, jnp.exp(ho) - 1.0))   # ELU (concat=True head)

    # single store of the concatenated heads
    out_ref[...] = jnp.concatenate(outs, axis=1).astype(out_ref.dtype)

    # (dropout == identity in eval mode)


# ------------------------------- wrapper ------------------------------------ #

def _encoder_forward(params, ind_load, load, ind_generator, generator, adjacent,
                     alpha):
    n_head, d_node, d_hid = params["W_att"].shape
    n_load = load.shape[0]
    n_gen = generator.shape[0]
    n_nodes = n_load + n_gen
    d_out = n_head * d_hid

    # ---- trace-time operand packing / folding (tiny; constant-folds when the
    # parameters are compile-time constants) ----------------------------------
    # Fold attention vectors into the node dimension:
    #   f1 = (x @ W_h) @ a1_h = x @ (W_h @ a1_h)   -> column h of w_f1
    #   f2 = (x @ W_h) @ a2_h = x @ (W_h @ a2_h)   -> row h of w_f2t
    # (computed elementwise+sum to stay exact in f32)
    w_f1 = jnp.stack(
        [jnp.sum(params["W_att"][h] * params["a1"][h, 0][None, :], axis=1)
         for h in range(n_head)], axis=1)                        # (d_node, H)
    w_f2t = jnp.stack(
        [jnp.sum(params["W_att"][h] * params["a2"][h, 0][None, :], axis=1)
         for h in range(n_head)], axis=0)                        # (H, d_node)

    # one (4 + H, d_node) parameter slab
    prm = jnp.concatenate([
        params["w_align"].reshape(1, d_node),
        params["b_align"].reshape(1, d_node),
        params["ln_gamma"].reshape(1, d_node),
        params["ln_beta"].reshape(1, d_node),
        w_f2t,
    ], axis=0).astype(jnp.float32)

    # head weights stacked along lanes + folded f1 columns -> one matmul
    w_big = jnp.concatenate(
        [params["W_att"][h] for h in range(n_head)] + [w_f1],
        axis=1).astype(jnp.float32)                              # (d_node, H*d_hid + H)

    # one index row and one feature slab (load column padded to d_node width)
    ind_all = jnp.concatenate(
        [ind_load.reshape(-1), ind_generator.reshape(-1)]
    ).reshape(1, n_nodes).astype(jnp.int32)
    feat = jnp.concatenate([
        jnp.pad(load.astype(jnp.float32), ((0, 0), (0, d_node - 1))),
        generator.astype(jnp.float32),
    ], axis=0)                                                   # (n_nodes, d_node)

    # adjacency as an int8 0/1 mask (quarter the HBM/VMEM traffic of f32)
    adj_i8 = (adjacent > 0).astype(jnp.int8)

    kernel = functools.partial(
        _encoder_kernel, n_head=n_head, d_hid=d_hid, n_load=n_load,
        alpha=float(alpha))

    # No grid: every operand is a single full-array VMEM block (no pointless
    # double-buffering); 5 operands total.
    return pl.pallas_call(
        kernel,
        out_shape=jax.ShapeDtypeStruct((n_nodes, d_out), jnp.float32),
        compiler_params=pltpu.CompilerParams(vmem_limit_bytes=32 * 1024 * 1024),
    )(ind_all, feat, prm, w_big, adj_i8)


encoder_forward = jax.jit(_encoder_forward, static_argnames=("alpha",))


# ------------------------------ reference ----------------------------------- #

def encoder_reference(params, ind_load, load, ind_generator, generator, adj, alpha):
    la = load.astype(jnp.float32) @ params["w_align"].T + params["b_align"]
    n_nodes = load.shape[0] + generator.shape[0]
    d_node = params["w_align"].shape[0]
    x = jnp.zeros((n_nodes, d_node), jnp.float32)
    x = x.at[ind_load.flatten()].set(la)
    x = x.at[ind_generator.flatten()].set(generator.astype(jnp.float32))
    mean = x.mean(-1, keepdims=True)
    var = ((x - mean) ** 2).mean(-1, keepdims=True)
    x = (x - mean) / jnp.sqrt(var + 1e-6) * params["ln_gamma"] + params["ln_beta"]
    outs = []
    for h in range(params["W_att"].shape[0]):
        wh = x @ params["W_att"][h]
        f1 = jnp.sum(wh * params["a1"][h, 0], axis=-1)
        f2 = jnp.sum(wh * params["a2"][h, 0], axis=-1)
        e = f1[:, None] + f2[None, :]
        e = jnp.where(e > 0, e, alpha * e)
        masked = jnp.where(adj > 0, e, -9e15)
        attn = jax.nn.softmax(masked, axis=1)
        hp = attn @ wh
        outs.append(jnp.where(hp > 0, hp, jnp.exp(hp) - 1.0))
    return jnp.concatenate(outs, axis=1)


# --------------------------------- main ------------------------------------- #

if __name__ == "__main__":
    # small shapes consistent with the module's forward
    n_load, n_gen = 12, 4
    n_nodes = n_load + n_gen
    d_node, d_hid, n_head = 16, 16, 2
    alpha, dropout = 0.2, 0.5  # dropout unused in eval mode

    key = jax.random.PRNGKey(0)
    k = jax.random.split(key, 10)

    # deterministic parameter init (shapes from Encoder.__init__ / standard GAT layer)
    params = {
        "w_align": jax.random.normal(k[0], (d_node, 1), jnp.float32) * 0.5,   # Linear(1, d_node).weight
        "b_align": jax.random.normal(k[1], (d_node,), jnp.float32) * 0.1,     # Linear(1, d_node).bias
        "ln_gamma": jnp.ones((d_node,), jnp.float32),                         # LayerNorm defaults
        "ln_beta": jnp.zeros((d_node,), jnp.float32),
        "W_att": jax.random.normal(k[2], (n_head, d_node, d_hid), jnp.float32) * 0.3,
        "a1": jax.random.normal(k[3], (n_head, 1, d_hid), jnp.float32) * 0.3,  # first half of `a`
        "a2": jax.random.normal(k[4], (n_head, 1, d_hid), jnp.float32) * 0.3,  # second half of `a`
    }

    # inputs
    perm = jax.random.permutation(k[5], n_nodes)
    ind_load = perm[:n_load].reshape(n_load, 1).astype(jnp.int32)
    ind_generator = perm[n_load:].reshape(n_gen, 1).astype(jnp.int32)
    load = jax.random.normal(k[6], (n_load, 1), jnp.float32)
    generator = jax.random.normal(k[7], (n_gen, d_node), jnp.float32)
    adj_upper = (jax.random.uniform(k[8], (n_nodes, n_nodes)) > 0.5).astype(jnp.float32)
    adjacent = jnp.clip(adj_upper + adj_upper.T + jnp.eye(n_nodes), 0.0, 1.0)

    out = encoder_forward(params, ind_load, load, ind_generator, generator,
                          adjacent, alpha=alpha)
    out = jax.block_until_ready(out)

    ref = encoder_reference(params, ind_load, load, ind_generator, generator,
                            adjacent, alpha)
    # tolerance 2e-3 because the softmax denominator uses the EUP approximate
    # reciprocal (pl.reciprocal(..., approx=True)); attention rows sum to
    # 1 +/- ~1e-3 (flagged: fine for inference, revisit before using in training).
    np.testing.assert_allclose(np.asarray(out), np.asarray(ref), rtol=2e-3, atol=2e-3)

    assert out.shape == (n_nodes, n_head * d_hid)
    print("KERNEL_OK")
</pallas_src>

<mosaic_0001>
module attributes {stable_mosaic.version = 11 : i64} {
  func.func @_encoder_kernel(%arg0: memref<1x16xi32, #tpu.memory_space<vmem>>, %arg1: memref<16x16xf32, #tpu.memory_space<vmem>>, %arg2: memref<6x16xf32, #tpu.memory_space<vmem>>, %arg3: memref<16x34xf32, #tpu.memory_space<vmem>>, %arg4: memref<16x16xi8, #tpu.memory_space<vmem>>, %arg5: memref<16x32xf32, #tpu.memory_space<vmem>>) attributes {dimension_semantics = [], scalar_prefetch = 0 : i64, scratch_operands = 0 : i64, tpu.core_type = #tpu.core_type<tc>} {
    %c0 = arith.constant 0 : index
    %c0_0 = arith.constant 0 : index
    %0 = vector.load %arg2[%c0, %c0_0] : memref<6x16xf32, #tpu.memory_space<vmem>>, vector<1x16xf32>
    %c1 = arith.constant 1 : index
    %c0_1 = arith.constant 0 : index
    %1 = vector.load %arg2[%c1, %c0_1] : memref<6x16xf32, #tpu.memory_space<vmem>>, vector<1x16xf32>
    %c2 = arith.constant 2 : index
    %c0_2 = arith.constant 0 : index
    %2 = vector.load %arg2[%c2, %c0_2] : memref<6x16xf32, #tpu.memory_space<vmem>>, vector<1x16xf32>
    %c3 = arith.constant 3 : index
    %c0_3 = arith.constant 0 : index
    %3 = vector.load %arg2[%c3, %c0_3] : memref<6x16xf32, #tpu.memory_space<vmem>>, vector<1x16xf32>
    %c4 = arith.constant 4 : index
    %c0_4 = arith.constant 0 : index
    %4 = vector.load %arg2[%c4, %c0_4] : memref<6x16xf32, #tpu.memory_space<vmem>>, vector<2x16xf32>
    %c0_5 = arith.constant 0 : index
    %c0_6 = arith.constant 0 : index
    %5 = vector.load %arg1[%c0_5, %c0_6] : memref<16x16xf32, #tpu.memory_space<vmem>>, vector<16x16xf32>
    %6 = vector.extract_strided_slice %5 {offsets = [0, 0], sizes = [16, 1], strides = [1, 1]} : vector<16x16xf32> to vector<16x1xf32>
    %7 = vector.broadcast %6 : vector<16x1xf32> to vector<16x16xf32>
    %8 = vector.broadcast %0 : vector<1x16xf32> to vector<16x16xf32>
    %9 = arith.mulf %7, %8 : vector<16x16xf32>
    %10 = vector.broadcast %1 : vector<1x16xf32> to vector<16x16xf32>
    %11 = arith.addf %9, %10 : vector<16x16xf32>
    %12 = tpu.iota {dimensions = array<i32: 0>} : vector<16x1xi32>
    %c12_i32 = arith.constant 12 : i32
    %13 = vector.broadcast %c12_i32 : i32 to vector<16x1xi32>
    %14 = arith.cmpi slt, %12, %13 : vector<16x1xi32>
    %15 = vector.shape_cast %14 : vector<16x1xi1> to vector<16x1xi1>
    %16 = vector.broadcast %15 : vector<16x1xi1> to vector<16x16xi1>
    %17 = arith.select %16, %11, %5 : vector<16x16xi1>, vector<16x16xf32>
    %18 = tpu.iota {dimensions = array<i32: 0>} : vector<16x16xi32>
    %c0_7 = arith.constant 0 : index
    %c0_8 = arith.constant 0 : index
    %19 = vector.load %arg0[%c0_7, %c0_8] : memref<1x16xi32, #tpu.memory_space<vmem>>, vector<1x16xi32>
    %20 = vector.broadcast %19 : vector<1x16xi32> to vector<16x16xi32>
    %21 = arith.cmpi eq, %18, %20 : vector<16x16xi32>
    %22 = arith.extui %21 : vector<16x16xi1> to vector<16x16xi32>
    %23 = arith.sitofp %22 : vector<16x16xi32> to vector<16x16xf32>
    %cst = arith.constant dense<0.000000e+00> : vector<16x16xf32>
    %24 = tpu.matmul %23, %17, %cst {dimension_numbers = #tpu.dot_dimension_numbers<[1], [0], [0], [1], [0, 0, 1, 1], [], []>} : vector<16x16xf32>, vector<16x16xf32>, vector<16x16xf32> -> vector<16x16xf32>
    %cst_9 = arith.constant dense<0.000000e+00> : vector<16xf32>
    %25 = vector.multi_reduction <add>, %24, %cst_9 [1] : vector<16x16xf32> to vector<16xf32>
    %26 = vector.shape_cast %25 : vector<16xf32> to vector<16x1xf32>
    %cst_10 = arith.constant 1.600000e+01 : f32
    %27 = vector.broadcast %cst_10 : f32 to vector<16x1xf32>
    %28 = arith.divf %26, %27 : vector<16x1xf32>
    %29 = vector.broadcast %28 : vector<16x1xf32> to vector<16x16xf32>
    %30 = arith.subf %24, %29 : vector<16x16xf32>
    %31 = arith.mulf %30, %30 : vector<16x16xf32>
    %cst_11 = arith.constant dense<0.000000e+00> : vector<16xf32>
    %32 = vector.multi_reduction <add>, %31, %cst_11 [1] : vector<16x16xf32> to vector<16xf32>
    %33 = vector.shape_cast %32 : vector<16xf32> to vector<16x1xf32>
    %cst_12 = arith.constant 1.600000e+01 : f32
    %34 = vector.broadcast %cst_12 : f32 to vector<16x1xf32>
    %35 = arith.divf %33, %34 : vector<16x1xf32>
    %36 = vector.broadcast %28 : vector<16x1xf32> to vector<16x16xf32>
    %37 = arith.subf %24, %36 : vector<16x16xf32>
    %cst_13 = arith.constant 9.99999997E-7 : f32
    %38 = vector.broadcast %cst_13 : f32 to vector<16x1xf32>
    %39 = arith.addf %35, %38 : vector<16x1xf32>
    %40 = math.rsqrt %39 : vector<16x1xf32>
    %41 = vector.broadcast %40 : vector<16x1xf32> to vector<16x16xf32>
    %42 = arith.mulf %37, %41 : vector<16x16xf32>
    %43 = vector.broadcast %2 : vector<1x16xf32> to vector<16x16xf32>
    %44 = arith.mulf %42, %43 : vector<16x16xf32>
    %45 = vector.broadcast %3 : vector<1x16xf32> to vector<16x16xf32>
    %46 = arith.addf %44, %45 : vector<16x16xf32>
    %c0_14 = arith.constant 0 : index
    %c0_15 = arith.constant 0 : index
    %47 = vector.load %arg3[%c0_14, %c0_15] : memref<16x34xf32, #tpu.memory_space<vmem>>, vector<16x34xf32>
    %cst_16 = arith.constant dense<0.000000e+00> : vector<16x34xf32>
    %48 = tpu.matmul %46, %47, %cst_16 {dimension_numbers = #tpu.dot_dimension_numbers<[1], [0], [0], [1], [0, 0, 1, 1], [], []>} : vector<16x16xf32>, vector<16x34xf32>, vector<16x34xf32> -> vector<16x34xf32>
    %49 = vector.extract_strided_slice %48 {offsets = [0, 0], sizes = [16, 32], strides = [1, 1]} : vector<16x34xf32> to vector<16x32xf32>
    %50 = vector.extract_strided_slice %48 {offsets = [0, 32], sizes = [16, 2], strides = [1, 1]} : vector<16x34xf32> to vector<16x2xf32>
    %cst_17 = arith.constant dense<0.000000e+00> : vector<2x16xf32>
    %51 = tpu.matmul %4, %46, %cst_17 {dimension_numbers = #tpu.dot_dimension_numbers<[1], [1], [0], [0], [0, 0, 1, 0], [], []>} : vector<2x16xf32>, vector<16x16xf32>, vector<2x16xf32> -> vector<2x16xf32>
    %c0_18 = arith.constant 0 : index
    %c0_19 = arith.constant 0 : index
    %52 = vector.load %arg4[%c0_18, %c0_19] : memref<16x16xi8, #tpu.memory_space<vmem>>, vector<16x16xi8>
    %53 = arith.sitofp %52 : vector<16x16xi8> to vector<16x16xf32>
    %54 = vector.extract_strided_slice %50 {offsets = [0, 0], sizes = [16, 1], strides = [1, 1]} : vector<16x2xf32> to vector<16x1xf32>
    %55 = vector.extract_strided_slice %51 {offsets = [0, 0], sizes = [1, 16], strides = [1, 1]} : vector<2x16xf32> to vector<1x16xf32>
    %56 = vector.broadcast %54 : vector<16x1xf32> to vector<16x16xf32>
    %57 = vector.broadcast %55 : vector<1x16xf32> to vector<16x16xf32>
    %58 = arith.addf %56, %57 : vector<16x16xf32>
    %cst_20 = arith.constant 0.000000e+00 : f32
    %59 = vector.broadcast %cst_20 : f32 to vector<16x16xf32>
    %60 = arith.cmpf ogt, %58, %59 : vector<16x16xf32>
    %cst_21 = arith.constant 2.000000e-01 : f32
    %61 = vector.broadcast %cst_21 : f32 to vector<16x16xf32>
    %62 = arith.mulf %61, %58 : vector<16x16xf32>
    %63 = arith.select %60, %58, %62 : vector<16x16xi1>, vector<16x16xf32>
    %cst_22 = arith.constant dense<0xFF800000> : vector<16xf32>
    %64 = vector.multi_reduction <maximumf>, %63, %cst_22 [1] : vector<16x16xf32> to vector<16xf32>
    %65 = vector.shape_cast %64 : vector<16xf32> to vector<16x1xf32>
    %66 = vector.broadcast %65 : vector<16x1xf32> to vector<16x16xf32>
    %67 = arith.subf %63, %66 : vector<16x16xf32>
    %68 = math.exp %67 : vector<16x16xf32>
    %69 = arith.mulf %68, %53 : vector<16x16xf32>
    %cst_23 = arith.constant dense<0.000000e+00> : vector<16xf32>
    %70 = vector.multi_reduction <add>, %69, %cst_23 [1] : vector<16x16xf32> to vector<16xf32>
    %71 = vector.shape_cast %70 : vector<16xf32> to vector<16x1xf32>
    %72 = tpu.reciprocal %71 {approx = true} : vector<16x1xf32> -> vector<16x1xf32>
    %73 = vector.broadcast %72 : vector<16x1xf32> to vector<16x16xf32>
    %74 = arith.mulf %69, %73 : vector<16x16xf32>
    %75 = vector.extract_strided_slice %49 {offsets = [0, 0], sizes = [16, 16], strides = [1, 1]} : vector<16x32xf32> to vector<16x16xf32>
    %cst_24 = arith.constant dense<0.000000e+00> : vector<16x16xf32>
    %76 = tpu.matmul %74, %75, %cst_24 {dimension_numbers = #tpu.dot_dimension_numbers<[1], [0], [0], [1], [0, 0, 1, 1], [], []>} : vector<16x16xf32>, vector<16x16xf32>, vector<16x16xf32> -> vector<16x16xf32>
    %cst_25 = arith.constant 0.000000e+00 : f32
    %77 = vector.broadcast %cst_25 : f32 to vector<16x16xf32>
    %78 = arith.cmpf ogt, %76, %77 : vector<16x16xf32>
    %79 = math.exp %76 : vector<16x16xf32>
    %cst_26 = arith.constant 1.000000e+00 : f32
    %80 = vector.broadcast %cst_26 : f32 to vector<16x16xf32>
    %81 = arith.subf %79, %80 : vector<16x16xf32>
    %82 = arith.select %78, %76, %81 : vector<16x16xi1>, vector<16x16xf32>
    %83 = vector.extract_strided_slice %50 {offsets = [0, 1], sizes = [16, 1], strides = [1, 1]} : vector<16x2xf32> to vector<16x1xf32>
    %84 = vector.extract_strided_slice %51 {offsets = [1, 0], sizes = [1, 16], strides = [1, 1]} : vector<2x16xf32> to vector<1x16xf32>
    %85 = vector.broadcast %83 : vector<16x1xf32> to vector<16x16xf32>
    %86 = vector.broadcast %84 : vector<1x16xf32> to vector<16x16xf32>
    %87 = arith.addf %85, %86 : vector<16x16xf32>
    %cst_27 = arith.constant 0.000000e+00 : f32
    %88 = vector.broadcast %cst_27 : f32 to vector<16x16xf32>
    %89 = arith.cmpf ogt, %87, %88 : vector<16x16xf32>
    %cst_28 = arith.constant 2.000000e-01 : f32
    %90 = vector.broadcast %cst_28 : f32 to vector<16x16xf32>
    %91 = arith.mulf %90, %87 : vector<16x16xf32>
    %92 = arith.select %89, %87, %91 : vector<16x16xi1>, vector<16x16xf32>
    %cst_29 = arith.constant dense<0xFF800000> : vector<16xf32>
    %93 = vector.multi_reduction <maximumf>, %92, %cst_29 [1] : vector<16x16xf32> to vector<16xf32>
    %94 = vector.shape_cast %93 : vector<16xf32> to vector<16x1xf32>
    %95 = vector.broadcast %94 : vector<16x1xf32> to vector<16x16xf32>
    %96 = arith.subf %92, %95 : vector<16x16xf32>
    %97 = math.exp %96 : vector<16x16xf32>
    %98 = arith.mulf %97, %53 : vector<16x16xf32>
    %cst_30 = arith.constant dense<0.000000e+00> : vector<16xf32>
    %99 = vector.multi_reduction <add>, %98, %cst_30 [1] : vector<16x16xf32> to vector<16xf32>
    %100 = vector.shape_cast %99 : vector<16xf32> to vector<16x1xf32>
    %101 = tpu.reciprocal %100 {approx = true} : vector<16x1xf32> -> vector<16x1xf32>
    %102 = vector.broadcast %101 : vector<16x1xf32> to vector<16x16xf32>
    %103 = arith.mulf %98, %102 : vector<16x16xf32>
    %104 = vector.extract_strided_slice %49 {offsets = [0, 16], sizes = [16, 16], strides = [1, 1]} : vector<16x32xf32> to vector<16x16xf32>
    %cst_31 = arith.constant dense<0.000000e+00> : vector<16x16xf32>
    %105 = tpu.matmul %103, %104, %cst_31 {dimension_numbers = #tpu.dot_dimension_numbers<[1], [0], [0], [1], [0, 0, 1, 1], [], []>} : vector<16x16xf32>, vector<16x16xf32>, vector<16x16xf32> -> vector<16x16xf32>
    %cst_32 = arith.constant 0.000000e+00 : f32
    %106 = vector.broadcast %cst_32 : f32 to vector<16x16xf32>
    %107 = arith.cmpf ogt, %105, %106 : vector<16x16xf32>
    %108 = math.exp %105 : vector<16x16xf32>
    %cst_33 = arith.constant 1.000000e+00 : f32
    %109 = vector.broadcast %cst_33 : f32 to vector<16x16xf32>
    %110 = arith.subf %108, %109 : vector<16x16xf32>
    %111 = arith.select %107, %105, %110 : vector<16x16xi1>, vector<16x16xf32>
    %112 = tpu.concatenate %82, %111 in 1 : vector<16x16xf32>, vector<16x16xf32> -> vector<16x32xf32>
    %c0_34 = arith.constant 0 : index
    %c0_35 = arith.constant 0 : index
    %113 = vector.load %arg5[%c0_34, %c0_35] : memref<16x32xf32, #tpu.memory_space<vmem>>, vector<16x32xf32>
    tpu.vector_store %arg5[%c0_34, %c0_35], %112 {strides = array<i32>} : memref<16x32xf32, #tpu.memory_space<vmem>>, vector<16x32xf32>,
    return
  }
}

</mosaic_0001>

<bundles_post_ra>
// kernel: _encoder_forward.1
= control target key start
LH: loop header
LB: loop body
LE: loop exit
PB: predicated region body
PF: predicated region fallthrough
CT: control target
= control target key end

     0   :  { %v510_v1 = vmov 0   ;;  %s613_s0 = inlined_call_operand.vmem [shape: s32[1,16], index: 0, kind: input, shape index: {}]   ;;  %s614_s1 = inlined_call_operand.vmem [shape: f32[16,16], index: 1, kind: input, shape index: {}]   ;;  %s615_s2 = inlined_call_operand.vmem [shape: f32[6,16], index: 2, kind: input, shape index: {}]   ;;  %s616_s3 = inlined_call_operand.vmem [shape: f32[16,34], index: 3, kind: input, shape index: {}]   ;;  %s617_s4 = inlined_call_operand.vmem [shape: s8[16,16], index: 4, kind: input, shape index: {}]   ;;  %s618_s5 = inlined_call_operand.hbm [shape: f32[16,32], index: 5, kind: output, shape index: {}]  }
   0x1   :  { %v27_v0 = vld [vmem:[%s614_s1 + $0x8] sm:$0xff]  ;;  %440 = vset.pattern.permute.xlu0 %v510_v1 }
   0x2   :  { %35 = vperm.xlu0 %440, %v27_v0  }
   0x3   :  { %10 = vsyncpa [#allocation3], 0  ;;  %v26_v2 = vld [vmem:[%s614_s1] sm:$0xff]  ;;  %v44_v3 = vlaneseq  ;;  %v511_v16 = vmov 0.0   ;;  %vm63_vm2 = vcmask 130048   ;;  %v512_v23 = vmov 16.0  }
   0x4   :  { %v449_v5 = vld [vmem:[%s615_s2] ss:$0 sm:$0xff]  ;;  %v450_v7 = vld [vmem:[%s615_s2 + $0x1] ss:$0 sm:$0xff]  ;;  %454 = vrcp.f32 %v512_v23  ;;  %v151_v40 = vld [vmem:[%s616_s3 + $0x8] sm:$0xff]  ;;  %v513_v50 = vmov 32  }
   0x5   :  { %v45_v4 = vshrl.u32 %v44_v3, 7  ;;  %v451_v11 = vld [vmem:[%s613_s0] ss:$0 sm:$0xff]  ;;  %172 = vmatpush.msra.mxu1 %v151_v40  ;;  %443 = vset.pattern.permute.xlu2 %v513_v50  ;;  %v514_v51 = vmov 33   ;;  %v452_v58 = vld [vmem:[%s615_s2 + $0x2] ss:$0 sm:$0xff] }
   0x6   :  { %v150_v41 = vld [vmem:[%s616_s3] sm:$0xff]  ;;  %442 = vset.pattern.permute.xlu1 %v514_v51  ;;  %s517_s12 = smov [#allocation2]   ;;  %s397_s16 = sshll.u32 %s618_s5, 4  ;;  %s398_s16 = int_to_ptr.hbm [resolvable:$true] %s397_s16 }
   0x7   :  { %v46_v6 = vadd.s32 8, %v45_v4  ;;  %vm57_vm1 = vcmp.eq.s32.totalorder %v45_v4, %v451_v11  ;;  %173 = vmatpush.msra.mxu1 %v150_v41  ;;  %v453_v62 = vld [vmem:[%s615_s2 + $0x3] ss:$0 sm:$0xff]  ;;  %s395_s13 = sshll.u32 %s517_s12, 4  ;;  %s518_s17 = smov 128   ;;  %s396_s13 = int_to_ptr.vmem [resolvable:$true] %s395_s13 }
   0x8   :  { %v409_v17 = vsel %vm57_vm1, 1.0, %v511_v16  ;;  %v427_v40 = vld [vmem:[%s617_s4] sm:$0xf]   ;;  %s516_s4 = smov 16   ;;  %s519_s18 = smov 8  }
   0x9   :  { %vm48_vm0 = vcmp.lt.s32.totalorder %v46_v6, 12  ;;  %vm58_vm3 = vcmp.eq.s32.totalorder %v46_v6, %v451_v11 }
   0xa   :  { %30 = vperm.xlu0 %440, %v26_v2   ;;  %v410_v18 = vsel %vm58_vm3, 1.0, %v511_v16  ;;  %v455_v24 = vpop.eup %454  ;;  %vm388_vm3 = vcmask 261120  }
   0xb   :  { %v100_v25 = vmul.f32 16.0, %v455_v24  ;;  %vm104_vm4 = vweird.f32 %v455_v24 }
   0xd   :  { %v101_v26 = vsub.f32 1.0, %v100_v25 }
   0xf   :  { %v102_v27 = vmul.f32 %v455_v24, %v101_v26 }
  0x11   :  { %v103_v28 = vadd.f32 %v455_v24, %v102_v27 }
  0x12   :  { %441 = vset.pattern.permute.xlu0 %v514_v51  ;;  %v429_v51 = vunpack.c.1.s8 %v427_v40 }
  0x13   :  { %v105_v29 = vsel %vm104_vm4, %v455_v24, %v103_v28 }
  0x74   :  { %v36_v8 = vpop.permute.xlu0 %35 }
  0x75   :  { %v40_v9 = vmul.f32 %v449_v5, %v36_v8  ;;  %v25_v8 = vld [vmem:[%s615_s2 + $0x4] sm:$0x3]  ;;  %s515_s2 = smov 112  }
  0x77   :  { %v43_v10 = vadd.f32 %v450_v7, %v40_v9 }
  0x79   :  { %v54_v12 = vsel %vm48_vm0, %v43_v10, %v27_v0 }
  0x7a   :  { %84 = vmatpush.msra.mxu0 %v54_v12 }
  0x7c   :  { %v31_v13 = vpop.permute.xlu0 %30 }
  0x7d   :  { %v39_v14 = vmul.f32 %v449_v5, %v31_v13 }
  0x7f   :  { %v42_v15 = vadd.f32 %v450_v7, %v39_v14 }
  0x81   :  { %85 = vmatpush.msra.mxu0 %v42_v15 }
  0x82   :  { %411 = vmatmul.msk.f32.vlgmr.msra.gmra.mxu0 %vm63_vm2, %v409_v17 }
  0x8a   :  { %412 = vmatmul.msk.f32.gmra.mxu0 %vm63_vm2, %v410_v18 }
  0xff   :  { %v87_v19 = vpop.f32.mrf.mxu0 }
 0x100   :  { %v93_v20 = vsel %vm63_vm2, %v87_v19, 0.0 }
 0x101   :  { %94 = vadd.xlane.f32.xlu1 %v93_v20 }
 0x107   :  { %v90_v21 = vpop.f32.mrf.mxu0 }
 0x108   :  { %v96_v22 = vsel %vm63_vm2, %v90_v21, 0.0 }
 0x109   :  { %97 = vadd.xlane.f32.xlu1 %v96_v22 }
 0x174   :  { %v95_v30 = vpop.xlane.xlu1 %94 }
 0x175   :  { %v106_v31 = vmul.f32 %v105_v29, %v95_v30 }
 0x177   :  { %v108_v32 = vsub.f32 %v87_v19, %v106_v31 }
 0x179   :  { %v110_v33 = vmul.f32 %v108_v32, %v108_v32 }
 0x17b   :  { %v112_v34 = vsel %vm63_vm2, %v110_v33, 0.0 }
 0x17c   :  { %113 = vadd.xlane.f32.xlu2 %v112_v34  ;;  %v98_v35 = vpop.xlane.xlu1 %97 }
 0x17d   :  { %v107_v36 = vmul.f32 %v105_v29, %v98_v35 }
 0x17f   :  { %v109_v37 = vsub.f32 %v90_v21, %v107_v36 }
 0x181   :  { %v111_v38 = vmul.f32 %v109_v37, %v109_v37 }
 0x183   :  { %v115_v39 = vsel %vm63_vm2, %v111_v38, 0.0 }
 0x184   :  { %116 = vadd.xlane.f32.xlu2 %v115_v39 }
 0x1ef   :  { %v114_v42 = vpop.xlane.xlu2 %113 }
 0x1f0   :  { %v118_v43 = vmul.f32 %v114_v42, %v105_v29  ;;  %v428_v42 = vunpack.c.0.s8 %v427_v40 }
 0x1f2   :  { %v120_v44 = vadd.f32 1e-06, %v118_v43 }
 0x1f4   :  { %456 = vrsqrt.f32 %v120_v44  ;;  %vm128_vm6 = vweird.f32 %v120_v44 }
 0x1f7   :  { %v117_v45 = vpop.xlane.xlu2 %116 }
 0x1f8   :  { %v119_v46 = vmul.f32 %v117_v45, %v105_v29 }
 0x1fa   :  { %v457_v47 = vpop.eup %456  ;;  %v121_v48 = vadd.f32 1e-06, %v119_v46 }
 0x1fb   :  { %v123_v49 = vmul.f32 %v457_v47, %v120_v44  ;;  %vm129_vm5 = vweird.f32 %v457_v47 }
 0x1fc   :  { %458 = vrsqrt.f32 %v121_v48  ;;  %vm130_vm7 = vmor %vm128_vm6, %vm129_vm5  ;;  %vm138_vm9 = vweird.f32 %v121_v48 }
 0x1fd   :  { %v124_v52 = vmul.f32 %v457_v47, %v123_v49 }
 0x1ff   :  { %v125_v53 = vmul.f32 0.5, %v124_v52 }
 0x201   :  { %v126_v54 = vsub.f32 1.5, %v125_v53 }
 0x202   :  { %v459_v55 = vpop.eup %458 }
 0x203   :  { %v127_v56 = vmul.f32 %v457_v47, %v126_v54  ;;  %v133_v57 = vmul.f32 %v459_v55, %v121_v48  ;;  %vm139_vm8 = vweird.f32 %v459_v55 }
 0x204   :  { %vm140_vm10 = vmor %vm138_vm9, %vm139_vm8 }
 0x205   :  { %v131_v59 = vsel %vm130_vm7, %v457_v47, %v127_v56  ;;  %v134_v60 = vmul.f32 %v459_v55, %v133_v57  ;;  %v208_v47 = vcvt.s32.f32 %v428_v42 }
 0x206   :  { %v142_v61 = vmul.f32 %v131_v59, %v108_v32 }
 0x207   :  { %v135_v63 = vmul.f32 0.5, %v134_v60 }
 0x208   :  { %v145_v0 = vmul.f32 %v452_v58, %v142_v61 }
 0x209   :  { %v136_v1 = vsub.f32 1.5, %v135_v63 }
 0x20a   :  { %v148_v2 = vadd.f32 %v453_v62, %v145_v0 }
 0x20b   :  { %v137_v3 = vmul.f32 %v459_v55, %v136_v1 }
 0x20c   :  { %413 = vmatmul.msk.f32.vlgmr.msra.gmra.mxu1 %vm63_vm2, %v148_v2 }
 0x20d   :  { %v141_v4 = vsel %vm140_vm10, %v459_v55, %v137_v3  ;;  %v209_v55 = vcvt.s32.f32 %v429_v51 }
 0x20e   :  { %v143_v5 = vmul.f32 %v141_v4, %v109_v37 }
 0x210   :  { %v146_v6 = vmul.f32 %v452_v58, %v143_v5 }
 0x212   :  { %v149_v7 = vadd.f32 %v453_v62, %v146_v6 }
 0x214   :  { %414 = vmatmul.msk.f32.gmra.mxu1 %vm63_vm2, %v149_v7  ;;  %415 = vmatpush.xpose.msk.msrb.mxu0 %vm63_vm2, %v149_v7 }
 0x218   :  { %416 = vmatpush.xpose.msk.msrb.mxu0 %vm63_vm2, %v148_v2 }
 0x21b   :  { %417 = vmatmul.msk.f32.vlgmr.msrb.gmra.mxu0 %vm63_vm2, %v25_v8 }
 0x289   :  { %v175_v9 = vpop.f32.mrf.mxu1 }
 0x28a   :  { %293 = vperm.xlu0 %441, %v175_v9   ;;  %212 = vperm.xlu2 %443, %v175_v9  }
 0x291   :  { %v178_v10 = vpop.f32.mrf.mxu1 }
 0x292   :  { %v444_v11 = vpack.i.bf16 %v175_v9, %v178_v10  ;;  %217 = vperm.xlu2 %443, %v178_v10   ;;  %297 = vperm.xlu1 %442, %v178_v10  }
 0x293   :  { %273 = vmatpush.msra.mxu3 %v178_v10 }
 0x295   :  { %274 = vmatpush.msra.mxu3 %v175_v9 }
 0x298   :  { %v201_v12 = vpop.f32.mrf.mxu0 }
 0x299   :  { %v220_v13 = vperm.slane %v201_v12, 0  ;;  %v300_v19 = vperm.slane %v201_v12, 1 }
 0x2e4   :  { %v213_v14 = vpop.permute.xlu2 %212 }
 0x2e5   :  { %v221_v15 = vadd.f32 %v220_v13, %v213_v14 }
 0x2e7   :  { %v225_v16 = vmul.f32 0.2, %v221_v15  ;;  %vm223_vm11 = vcmp.gt.f32.partialorder %v221_v15, 0.0 }
 0x2e9   :  { %v227_v17 = vsel %vm223_vm11, %v221_v15, %v225_v16 }
 0x2ea   :  { %v229_v18 = vsel %vm63_vm2, %v227_v17, -inf }
 0x2eb   :  { %230 = vmax.xlane.f32.xlu2 %v229_v18 }
 0x2ec   :  { %v218_v20 = vpop.permute.xlu2 %217 }
 0x2ed   :  { %v222_v23 = vadd.f32 %v220_v13, %v218_v20 }
 0x2ef   :  { %v226_v27 = vmul.f32 0.2, %v222_v23  ;;  %vm224_vm13 = vcmp.gt.f32.partialorder %v222_v23, 0.0 }
 0x2f1   :  { %v228_v31 = vsel %vm224_vm13, %v222_v23, %v226_v27 }
 0x2f2   :  { %v232_v34 = vsel %vm63_vm2, %v228_v31, -inf }
 0x2fc   :  { %v294_v21 = vpop.permute.xlu0 %293 }
 0x2fd   :  { %v301_v22 = vadd.f32 %v300_v19, %v294_v21 }
 0x2ff   :  { %v305_v24 = vmul.f32 0.2, %v301_v22  ;;  %vm303_vm12 = vcmp.gt.f32.partialorder %v301_v22, 0.0 }
 0x301   :  { %v307_v25 = vsel %vm303_vm12, %v301_v22, %v305_v24 }
 0x302   :  { %v309_v26 = vsel %vm63_vm2, %v307_v25, -inf }
 0x303   :  { %310 = vmax.xlane.f32.xlu0 %v309_v26 }
 0x304   :  { %v298_v28 = vpop.permute.xlu1 %297 }
 0x305   :  { %v302_v29 = vadd.f32 %v300_v19, %v298_v28 }
 0x307   :  { %v306_v30 = vmul.f32 0.2, %v302_v29  ;;  %vm304_vm14 = vcmp.gt.f32.partialorder %v302_v29, 0.0 }
 0x309   :  { %v308_v32 = vsel %vm304_vm14, %v302_v29, %v306_v30 }
 0x30a   :  { %v312_v33 = vsel %vm63_vm2, %v308_v32, -inf }
 0x30b   :  { %313 = vmax.xlane.f32.xlu1 %v312_v33  ;;  %233 = vmax.xlane.f32.xlu0 %v232_v34 }
 0x324   :  { %445 = vrot.lane.b32.xlu1 %v444_v11, %s515_s2 }
 0x35e   :  { %v231_v35 = vpop.xlane.xlu2 %230 }
 0x35f   :  { %v235_v37 = vsub.f32 %v227_v17, %v231_v35 }
 0x361   :  { %v237_v41 = vmul.f32 1.442695, %v235_v37 }
 0x376   :  { %v311_v36 = vpop.xlane.xlu0 %310 }
 0x377   :  { %v315_v38 = vsub.f32 %v307_v25, %v311_v36 }
 0x379   :  { %v317_v39 = vmul.f32 1.442695, %v315_v38 }
 0x37b   :  { %460 = vpow2.f32 %v317_v39 }
 0x37c   :  { %462 = vpow2.f32 %v237_v41 }
 0x37e   :  { %v314_v43 = vpop.xlane.xlu1 %313  ;;  %v234_v44 = vpop.xlane.xlu0 %233 }
 0x37f   :  { %v316_v45 = vsub.f32 %v308_v32, %v314_v43  ;;  %v236_v46 = vsub.f32 %v228_v31, %v234_v44 }
 0x381   :  { %v461_v48 = vpop.eup %460  ;;  %v319_v49 = vmul.f32 1.442695, %v316_v45  ;;  %v239_v52 = vmul.f32 1.442695, %v236_v46 }
 0x382   :  { %v321_v50 = vmul.f32 %v461_v48, %v208_v47  ;;  %v463_v54 = vpop.eup %462 }
 0x383   :  { %464 = vpow2.f32 %v319_v49  ;;  %v241_v56 = vmul.f32 %v463_v54, %v208_v47 }
 0x384   :  { %v323_v53 = vsel %vm63_vm2, %v321_v50, 0.0  ;;  %466 = vpow2.f32 %v239_v52 }
 0x385   :  { %324 = vadd.xlane.f32.xlu0 %v323_v53  ;;  %v243_v60 = vsel %vm63_vm2, %v241_v56, 0.0 }
 0x389   :  { %v465_v57 = vpop.eup %464 }
 0x38a   :  { %v322_v58 = vmul.f32 %v465_v57, %v209_v55  ;;  %v467_v61 = vpop.eup %466 }
 0x38b   :  { %v242_v62 = vmul.f32 %v467_v61, %v209_v55 }
 0x38c   :  { %v326_v59 = vsel %vm63_vm2, %v322_v58, 0.0 }
 0x38d   :  { %327 = vadd.xlane.f32.xlu2 %v326_v59  ;;  %244 = vadd.xlane.f32.xlu0 %v243_v60  ;;  %v246_v63 = vsel %vm63_vm2, %v242_v62, 0.0 }
 0x395   :  { %247 = vadd.xlane.f32.xlu2 %v246_v63 }
 0x396   :  { %v446_v0 = vpop.permute.xlu1 %445 }
 0x397   :  { %v447_v1 = vunpack.i.l.bf16 %v446_v0  ;;  %v448_v2 = vunpack.i.h.bf16 %v446_v0 }
 0x399   :  { %359 = vmatpush.msra.mxu2 %v447_v1 }
 0x39b   :  { %360 = vmatpush.msra.mxu2 %v448_v2 }
 0x3f8   :  { %v325_v3 = vpop.xlane.xlu0 %324 }
 0x3f9   :  { %468 = vrcp.f32 %v325_v3 }
 0x3ff   :  { %v469_v4 = vpop.eup %468 }
 0x400   :  { %v245_v5 = vpop.xlane.xlu0 %244  ;;  %v328_v6 = vpop.xlane.xlu2 %327  ;;  %v331_v7 = vmul.f32 %v469_v4, %v321_v50 }
 0x401   :  { %470 = vrcp.f32 %v245_v5 }
 0x402   :  { %472 = vrcp.f32 %v328_v6  ;;  %422 = vmatmul.msk.f32.vlgmr.msra.gmra.mxu2 %vm63_vm2, %v331_v7 }
 0x407   :  { %v471_v8 = vpop.eup %470 }
 0x408   :  { %v473_v9 = vpop.eup %472  ;;  %v248_v10 = vpop.xlane.xlu2 %247  ;;  %v251_v11 = vmul.f32 %v471_v8, %v241_v56 }
 0x409   :  { %474 = vrcp.f32 %v248_v10  ;;  %v332_v12 = vmul.f32 %v473_v9, %v322_v58 }
 0x40a   :  { %418 = vmatmul.msk.f32.vlgmr.msra.gmra.mxu3 %vm63_vm2, %v251_v11 }
 0x40b   :  { %423 = vmatmul.msk.f32.gmra.mxu2 %vm63_vm2, %v332_v12 }
 0x40f   :  { %v475_v13 = vpop.eup %474 }
 0x410   :  { %v252_v14 = vmul.f32 %v475_v13, %v242_v62 }
 0x412   :  { %419 = vmatmul.msk.f32.gmra.mxu3 %vm63_vm2, %v252_v14 }
 0x485   :  { %v362_v15 = vpop.f32.mrf.mxu2 }
 0x486   :  { %v370_v16 = vmul.f32 1.442695, %v362_v15  ;;  %vm368_vm15 = vcmp.gt.f32.partialorder %v362_v15, 0.0 }
 0x488   :  { %476 = vpow2.f32 %v370_v16 }
 0x48d   :  { %v276_v25 = vpop.f32.mrf.mxu3 }
 0x48e   :  { %v477_v17 = vpop.eup %476  ;;  %v365_v18 = vpop.f32.mrf.mxu2  ;;  %v284_v30 = vmul.f32 1.442695, %v276_v25  ;;  %vm282_vm4 = vcmp.gt.f32.partialorder %v276_v25, 0.0 }
 0x48f   :  { %v424_v19 = vadd.f32 -1.0, %v477_v17  ;;  %v372_v20 = vmul.f32 1.442695, %v365_v18  ;;  %vm369_vm0 = vcmp.gt.f32.partialorder %v365_v18, 0.0 }
 0x491   :  { %478 = vpow2.f32 %v372_v20  ;;  %v376_v21 = vsel %vm368_vm15, %v362_v15, %v424_v19 }
 0x492   :  { %380 = vrot.lane.b32.xlu0 %v376_v21, %s516_s4 }
 0x495   :  { %v279_v26 = vpop.f32.mrf.mxu3 }
 0x496   :  { %v286_v27 = vmul.f32 1.442695, %v279_v26  ;;  %vm283_vm1 = vcmp.gt.f32.partialorder %v279_v26, 0.0 }
 0x497   :  { %v479_v22 = vpop.eup %478 }
 0x498   :  { %v425_v23 = vadd.f32 -1.0, %v479_v22  ;;  %480 = vpow2.f32 %v286_v27 }
 0x499   :  { %482 = vpow2.f32 %v284_v30 }
 0x49a   :  { %v377_v24 = vsel %vm369_vm0, %v365_v18, %v425_v23 }
 0x49b   :  { %382 = vrot.lane.b32.xlu2 %v377_v24, %s516_s4 }
 0x49e   :  { %v481_v28 = vpop.eup %480 }
 0x49f   :  { %v421_v29 = vadd.f32 -1.0, %v481_v28  ;;  %v483_v34 = vpop.eup %482 }
 0x4a0   :  { %v420_v35 = vadd.f32 -1.0, %v483_v34 }
 0x4a1   :  { %v291_v31 = vsel %vm283_vm1, %v279_v26, %v421_v29 }
 0x4a2   :  { %v290_v36 = vsel %vm282_vm4, %v276_v25, %v420_v35 }
 0x4f5   :  { %v383_v32 = vpop.permute.xlu2 %382 }
 0x4f6   :  { %v387_v33 = vsel %vm63_vm2, %v291_v31, %v383_v32 }
 0x4f7   :  { %390 = vst.msk [vmem:[#allocation2 + $0x8] sm:$0xff] %vm388_vm3, %v387_v33 }
 0x504   :  { %v381_v37 = vpop.permute.xlu0 %380 }
 0x505   :  { %v386_v38 = vsel %vm63_vm2, %v290_v36, %v381_v37 }
 0x506   :  { %389 = vst.msk [vmem:[#allocation2] sm:$0xff] %vm388_vm3, %v386_v38 }
 0x507   :  { %403 = dma.vmem_to_hbm [thread:$0]  %s396_s13, 256, %s398_s16, [#allocation3], %s518_s17, %s518_s17, %s519_s18  }
 0x508   :  { %508 = dma.done.wait [#allocation3], 256  }
 0x509   :  { %509 = vsyncadd [#allocation3], 4294967040 }
 0x50a   :  { %408 = vsyncpa [#allocation3], 1 }

</bundles_post_ra>
